<compile_context>
chip_gen: v5e
topology: v5e:2x2
jax: 0.10.0
libtpu: 0.0.40
codegen_flags: <defaults>
</compile_context>

<pallas_src>
import jax
import jax.numpy as jnp
from jax.experimental import pallas as pl
from jax.experimental.pallas import tpu as pltpu


_NEG_LARGE = -1e30  # effectively -inf for padded class lanes (safe in f32)


def ffn_kernel(x_ref, w1_ref, b1_ref, w2_ref, b2_ref, out_ref):
    # ---- fc1: x @ W1 + b1 (x arrives f32, cast to bf16 on the VPU; f32 accumulate) ----
    x = x_ref[...].astype(jnp.bfloat16)
    h = jnp.dot(x, w1_ref[...], preferred_element_type=jnp.float32)
    h = h + b1_ref[...]                    # b1 is (1, H) f32, broadcasts over batch tile
    # ---- ReLU (f32 on the VPU) ----
    h = jnp.maximum(h, 0.0)
    # ---- fc2: h @ W2 + b2 (bf16 into the MXU, f32 accumulate) ----
    logits = jnp.dot(h.astype(jnp.bfloat16), w2_ref[...],
                     preferred_element_type=jnp.float32)
    # b2 padded lanes hold _NEG_LARGE (baked in at init); padded W2 columns are 0,
    # so padded logits are exactly _NEG_LARGE -> no in-kernel mask needed.
    logits = logits + b2_ref[...]
    # ---- LogSoftmax over the class (last / lane) axis, all f32 ----
    m = jnp.max(logits, axis=-1, keepdims=True)
    shifted = logits - m
    lse = jnp.log(jnp.sum(jnp.exp(shifted), axis=-1, keepdims=True))
    out_ref[...] = (shifted - lse).astype(out_ref.dtype)


def _round_up(a, b):
    return pl.cdiv(a, b) * b


def prepare_params(w1, b1, w2, b2):
    """One-time (init) conversion of weights: bf16 cast, lane-pad class axis to 128,
    bake the -inf class mask into the padded b2, reshape biases to 2D."""
    H = w1.shape[1]
    C = w2.shape[1]
    C_pad = _round_up(C, 128)

    w1_bf = w1.astype(jnp.bfloat16)                                   # [D_in, H]
    w2_p = jnp.pad(w2.astype(jnp.bfloat16), ((0, 0), (0, C_pad - C)))  # zero-padded cols
    b1_2d = b1.astype(jnp.float32).reshape(1, H)
    b2_2d = jnp.pad(b2.astype(jnp.float32), ((0, C_pad - C),),
                    constant_values=_NEG_LARGE).reshape(1, C_pad)
    return (w1_bf, b1_2d, w2_p, b2_2d, C)


def ffn_classifier_forward(x, params, *, tile_b=512, num_tensorcores=1):
    """x: [B, D_in] f32; params from prepare_params() -> [B, C] log-probs (f32)."""
    w1_bf, b1_2d, w2_p, b2_2d, C = params
    B, D_in = x.shape
    H = w1_bf.shape[1]
    C_pad = w2_p.shape[1]

    # Batch tile: multiple of 8 sublanes, capped at tile_b.
    #  - 1-TC chips (v5e/v6e): one big tile for small B -> single grid step, no
    #    per-step overhead.
    #  - multi-TC chips (v7x): aim for >= 2 steps per TensorCore so the
    #    "parallel" axis overlaps prefetch/compute on both cores.
    B8 = _round_up(B, 8)
    if num_tensorcores > 1:
        target = _round_up(pl.cdiv(B8, 2 * num_tensorcores), 8)
        TB = min(tile_b, max(target, 8))
    else:
        TB = min(tile_b, B8)
    B_pad = _round_up(B, TB)

    x_p = x.astype(jnp.float32)
    if B_pad != B:
        x_p = jnp.pad(x_p, ((0, B_pad - B), (0, 0)))

    grid = (B_pad // TB,)

    out = pl.pallas_call(
        ffn_kernel,
        out_shape=jax.ShapeDtypeStruct((B_pad, C_pad), jnp.float32),
        grid=grid,
        in_specs=[
            pl.BlockSpec((TB, D_in), lambda i: (i, 0)),   # x tile marches over batch
            pl.BlockSpec((D_in, H), lambda i: (0, 0)),    # W1 resident across grid steps
            pl.BlockSpec((1, H), lambda i: (0, 0)),       # b1 resident
            pl.BlockSpec((H, C_pad), lambda i: (0, 0)),   # W2 (lane-padded) resident
            pl.BlockSpec((1, C_pad), lambda i: (0, 0)),   # b2 (lane-padded, -inf mask baked in)
        ],
        out_specs=pl.BlockSpec((TB, C_pad), lambda i: (i, 0)),
        compiler_params=pltpu.CompilerParams(
            dimension_semantics=("parallel",),            # batch axis -> both TCs on v7x
        ),
    )(x_p, w1_bf, b1_2d, w2_p, b2_2d)

    # Strip batch padding and the padded class lanes.
    return out[:B, :C]


def reference_forward(x, w1, b1, w2, b2):
    h = jnp.maximum(x @ w1 + b1, 0.0)
    logits = h @ w2 + b2
    return jax.nn.log_softmax(logits, axis=1)


if __name__ == "__main__":
    # Shapes consistent with the module: hidden_dim=128, output_dim = #classes.
    batch = 256
    input_dim = 32
    hidden_dim = 128
    output_dim = 10

    key = jax.random.PRNGKey(0)
    kx, kw1, kb1, kw2, kb2 = jax.random.split(key, 5)

    x = jax.random.normal(kx, (batch, input_dim), dtype=jnp.float32)

    # Deterministic torch-like uniform init (nn.Linear semantics, stored transposed).
    bound1 = 1.0 / jnp.sqrt(input_dim)
    w1 = jax.random.uniform(kw1, (input_dim, hidden_dim), jnp.float32, -bound1, bound1)
    b1 = jax.random.uniform(kb1, (hidden_dim,), jnp.float32, -bound1, bound1)
    bound2 = 1.0 / jnp.sqrt(hidden_dim)
    w2 = jax.random.uniform(kw2, (hidden_dim, output_dim), jnp.float32, -bound2, bound2)
    b2 = jax.random.uniform(kb2, (output_dim,), jnp.float32, -bound2, bound2)

    # Hoisted one-time weight prep (bf16 cast, lane-pad, -inf mask baked into b2).
    params = prepare_params(w1, b1, w2, b2)

    out = ffn_classifier_forward(x, params)
    out = jax.block_until_ready(out)

    ref = reference_forward(x, w1, b1, w2, b2)
    assert out.shape == (batch, output_dim), out.shape
    # bf16 weights/activations into the MXU -> modest tolerance vs the f32 reference.
    max_err = float(jnp.max(jnp.abs(out - ref)))
    assert max_err < 3e-2, f"mismatch vs reference, max abs err = {max_err}"

    print("KERNEL_OK")
</pallas_src>

<mosaic_0001>
module attributes {stable_mosaic.version = 11 : i64} {
  func.func @ffn_kernel(%arg0: i32, %arg1: memref<256x32xf32, #tpu.memory_space<vmem>>, %arg2: memref<32x128xbf16, #tpu.memory_space<vmem>>, %arg3: memref<1x128xf32, #tpu.memory_space<vmem>>, %arg4: memref<128x128xbf16, #tpu.memory_space<vmem>>, %arg5: memref<1x128xf32, #tpu.memory_space<vmem>>, %arg6: memref<256x128xf32, #tpu.memory_space<vmem>>) attributes {dimension_semantics = [#tpu.dimension_semantics<parallel>], iteration_bounds = array<i64: 1>, scalar_prefetch = 0 : i64, scratch_operands = 0 : i64, tpu.core_type = #tpu.core_type<tc>, window_params = [{transform_indices = @transform_0, window_bounds = array<i64: 256, 32>}, {pipeline_mode = #tpu.pipeline_mode<synchronous>, transform_indices = @transform_1, window_bounds = array<i64: 32, 128>}, {pipeline_mode = #tpu.pipeline_mode<synchronous>, transform_indices = @transform_2, window_bounds = array<i64: 1, 128>}, {pipeline_mode = #tpu.pipeline_mode<synchronous>, transform_indices = @transform_3, window_bounds = array<i64: 128, 128>}, {pipeline_mode = #tpu.pipeline_mode<synchronous>, transform_indices = @transform_4, window_bounds = array<i64: 1, 128>}, {transform_indices = @transform_5, window_bounds = array<i64: 256, 128>}]} {
    %c0 = arith.constant 0 : index
    %c0_0 = arith.constant 0 : index
    %0 = vector.load %arg1[%c0, %c0_0] : memref<256x32xf32, #tpu.memory_space<vmem>>, vector<256x32xf32>
    %1 = arith.truncf %0 : vector<256x32xf32> to vector<256x32xbf16>
    %c0_1 = arith.constant 0 : index
    %c0_2 = arith.constant 0 : index
    %2 = vector.load %arg2[%c0_1, %c0_2] : memref<32x128xbf16, #tpu.memory_space<vmem>>, vector<32x128xbf16>
    %cst = arith.constant dense<0.000000e+00> : vector<256x128xf32>
    %3 = tpu.matmul %1, %2, %cst {dimension_numbers = #tpu.dot_dimension_numbers<[1], [0], [0], [1], [0, 0, 1, 1], [], []>} : vector<256x32xbf16>, vector<32x128xbf16>, vector<256x128xf32> -> vector<256x128xf32>
    %c0_3 = arith.constant 0 : index
    %c0_4 = arith.constant 0 : index
    %4 = vector.load %arg3[%c0_3, %c0_4] : memref<1x128xf32, #tpu.memory_space<vmem>>, vector<1x128xf32>
    %5 = vector.broadcast %4 : vector<1x128xf32> to vector<256x128xf32>
    %6 = arith.addf %3, %5 : vector<256x128xf32>
    %cst_5 = arith.constant 0.000000e+00 : f32
    %7 = vector.broadcast %cst_5 : f32 to vector<256x128xf32>
    %8 = arith.maximumf %6, %7 : vector<256x128xf32>
    %9 = arith.truncf %8 : vector<256x128xf32> to vector<256x128xbf16>
    %c0_6 = arith.constant 0 : index
    %c0_7 = arith.constant 0 : index
    %10 = vector.load %arg4[%c0_6, %c0_7] : memref<128x128xbf16, #tpu.memory_space<vmem>>, vector<128x128xbf16>
    %cst_8 = arith.constant dense<0.000000e+00> : vector<256x128xf32>
    %11 = tpu.matmul %9, %10, %cst_8 {dimension_numbers = #tpu.dot_dimension_numbers<[1], [0], [0], [1], [0, 0, 1, 1], [], []>} : vector<256x128xbf16>, vector<128x128xbf16>, vector<256x128xf32> -> vector<256x128xf32>
    %c0_9 = arith.constant 0 : index
    %c0_10 = arith.constant 0 : index
    %12 = vector.load %arg5[%c0_9, %c0_10] : memref<1x128xf32, #tpu.memory_space<vmem>>, vector<1x128xf32>
    %13 = vector.broadcast %12 : vector<1x128xf32> to vector<256x128xf32>
    %14 = arith.addf %11, %13 : vector<256x128xf32>
    %cst_11 = arith.constant dense<0xFF800000> : vector<256xf32>
    %15 = vector.multi_reduction <maximumf>, %14, %cst_11 [1] : vector<256x128xf32> to vector<256xf32>
    %16 = vector.shape_cast %15 : vector<256xf32> to vector<256x1xf32>
    %17 = vector.broadcast %16 : vector<256x1xf32> to vector<256x128xf32>
    %18 = arith.subf %14, %17 : vector<256x128xf32>
    %19 = math.exp %18 : vector<256x128xf32>
    %cst_12 = arith.constant dense<0.000000e+00> : vector<256xf32>
    %20 = vector.multi_reduction <add>, %19, %cst_12 [1] : vector<256x128xf32> to vector<256xf32>
    %21 = vector.shape_cast %20 : vector<256xf32> to vector<256x1xf32>
    %22 = math.log %21 : vector<256x1xf32>
    %23 = vector.broadcast %22 : vector<256x1xf32> to vector<256x128xf32>
    %24 = arith.subf %18, %23 : vector<256x128xf32>
    %c0_13 = arith.constant 0 : index
    %c0_14 = arith.constant 0 : index
    %25 = vector.load %arg6[%c0_13, %c0_14] : memref<256x128xf32, #tpu.memory_space<vmem>>, vector<256x128xf32>
    tpu.vector_store %arg6[%c0_13, %c0_14], %24 {strides = array<i32>} : memref<256x128xf32, #tpu.memory_space<vmem>>, vector<256x128xf32>,
    return
  }
  func.func @transform_0(%arg0: i32) -> (i32, i32) {
    %c0_i32 = arith.constant 0 : i32
    %c0_i32_0 = arith.constant 0 : i32
    return %arg0, %c0_i32 : i32, i32
  }
  func.func @transform_1(%arg0: i32) -> (i32, i32) {
    %c0_i32 = arith.constant 0 : i32
    %c0_i32_0 = arith.constant 0 : i32
    %c0_i32_1 = arith.constant 0 : i32
    return %c0_i32, %c0_i32_0 : i32, i32
  }
  func.func @transform_2(%arg0: i32) -> (i32, i32) {
    %c0_i32 = arith.constant 0 : i32
    %c0_i32_0 = arith.constant 0 : i32
    %c0_i32_1 = arith.constant 0 : i32
    return %c0_i32, %c0_i32_0 : i32, i32
  }
  func.func @transform_3(%arg0: i32) -> (i32, i32) {
    %c0_i32 = arith.constant 0 : i32
    %c0_i32_0 = arith.constant 0 : i32
    %c0_i32_1 = arith.constant 0 : i32
    return %c0_i32, %c0_i32_0 : i32, i32
  }
  func.func @transform_4(%arg0: i32) -> (i32, i32) {
    %c0_i32 = arith.constant 0 : i32
    %c0_i32_0 = arith.constant 0 : i32
    %c0_i32_1 = arith.constant 0 : i32
    return %c0_i32, %c0_i32_0 : i32, i32
  }
  func.func @transform_5(%arg0: i32) -> (i32, i32) {
    %c0_i32 = arith.constant 0 : i32
    %c0_i32_0 = arith.constant 0 : i32
    return %arg0, %c0_i32 : i32, i32
  }
}

</mosaic_0001>

<bundles_post_ra>
// kernel: tpu_custom_call.1
= control target key start
LH: loop header
LB: loop body
LE: loop exit
PB: predicated region body
PF: predicated region fallthrough
CT: control target
= control target key end

     0   :  { %s1546_s0 = inlined_call_operand.vmem [shape: f32[256,32], index: 0, kind: input, shape index: {}]   ;;  %s1547_s1 = inlined_call_operand.vmem [shape: bf16[32,128], index: 1, kind: input, shape index: {}]   ;;  %s1548_s2 = inlined_call_operand.vmem [shape: f32[1,128], index: 2, kind: input, shape index: {}]   ;;  %s1549_s3 = inlined_call_operand.vmem [shape: bf16[128,128], index: 3, kind: input, shape index: {}]   ;;  %s1550_s4 = inlined_call_operand.vmem [shape: f32[1,128], index: 4, kind: input, shape index: {}]   ;;  %s1551_s5 = inlined_call_operand.hbm [shape: f32[256,128], index: 5, kind: output, shape index: {}]  }
   0x1   :  { %v860_v0 = vld [vmem:[%s1547_s1 + $0x8] sm:$0xff]  ;;  %v859_v1 = vld [vmem:[%s1547_s1] sm:$0xff] }
   0x2   :  { %145 = vmatpush.bf16.msra.mxu0 %v860_v0  ;;  %v22_v2 = vld [vmem:[%s1546_s0] sm:$0xff]  ;;  %v23_v3 = vld [vmem:[%s1546_s0 + $0x8] sm:$0xff]  ;;  %869 = vmatpush.bf16.msra.mxu3 %v860_v0 }
   0x3   :  { %10 = vsyncpa [#allocation3], 0  ;;  %v54_v4 = vpack.c.bf16 %v23_v3, %v22_v2  ;;  %vm90_vm0 = vcmask 261120   ;;  %v24_v5 = vld [vmem:[%s1546_s0 + $0x10] sm:$0xff]  ;;  %v25_v6 = vld [vmem:[%s1546_s0 + $0x18] sm:$0xff]  ;;  %s791_s27 = sshll.u32 %s1551_s5, 4  ;;  %s792_s27 = int_to_ptr.hbm [resolvable:$true] %s791_s27 }
   0x4   :  { %v55_v7 = vpack.c.bf16 %v25_v6, %v24_v5  ;;  %v26_v8 = vld [vmem:[%s1546_s0 + $0x20] sm:$0xff]  ;;  %v27_v9 = vld [vmem:[%s1546_s0 + $0x28] sm:$0xff]  ;;  %v28_v11 = vld [vmem:[%s1546_s0 + $0x30] sm:$0xff]  ;;  %s1039_s1 = smov 128   ;;  %s1040_s28 = smov 8  }
   0x5   :  { %v56_v10 = vpack.c.bf16 %v27_v9, %v26_v8  ;;  %v29_v12 = vld [vmem:[%s1546_s0 + $0x38] sm:$0xff]  ;;  %v30_v14 = vld [vmem:[%s1546_s0 + $0x40] sm:$0xff]  ;;  %v31_v15 = vld [vmem:[%s1546_s0 + $0x48] sm:$0xff] }
   0x6   :  { %146 = vmatpush.bf16.msra.mxu0 %v859_v1  ;;  %870 = vmatpush.bf16.msra.mxu3 %v859_v1  ;;  %v57_v13 = vpack.c.bf16 %v29_v12, %v28_v11  ;;  %v58_v16 = vpack.c.bf16 %v31_v15, %v30_v14  ;;  %v868_v17 = vld [vmem:[%s1549_s3 + $0x38] sm:$0xff]  ;;  %v32_v18 = vld [vmem:[%s1546_s0 + $0x50] sm:$0xff]  ;;  %v866_v22 = vld [vmem:[%s1549_s3 + $0x28] sm:$0xff] }
   0x7   :  { %344 = vmatpush.bf16.msra.mxu1 %v868_v17  ;;  %871 = vmatpush.bf16.msra.mxu2 %v868_v17  ;;  %v33_v19 = vld [vmem:[%s1546_s0 + $0x58] sm:$0xff]  ;;  %v867_v21 = vld [vmem:[%s1549_s3 + $0x30] sm:$0xff]  ;;  %v865_v23 = vld [vmem:[%s1549_s3 + $0x20] sm:$0xff] }
   0x8   :  { %v59_v20 = vpack.c.bf16 %v33_v19, %v32_v18  ;;  %v34_v24 = vld [vmem:[%s1546_s0 + $0x60] sm:$0xff]  ;;  %v35_v25 = vld [vmem:[%s1546_s0 + $0x68] sm:$0xff]  ;;  %v864_v26 = vld [vmem:[%s1549_s3 + $0x18] sm:$0xff] }
   0x9   :  { %811 = vmatmul.msk.bf16.vlgmr.msra.gmra.mxu0 %vm90_vm0, %v54_v4  ;;  %v60_v27 = vpack.c.bf16 %v35_v25, %v34_v24  ;;  %v863_v28 = vld [vmem:[%s1549_s3 + $0x10] sm:$0xff]  ;;  %v41_v30 = vld [vmem:[%s1546_s0 + $0x98] sm:$0xff]  ;;  %v862_v32 = vld [vmem:[%s1549_s3 + $0x8] sm:$0xff] }
   0xa   :  { %v40_v29 = vld [vmem:[%s1546_s0 + $0x90] sm:$0xff]  ;;  %v861_v33 = vld [vmem:[%s1549_s3] sm:$0xff]  ;;  %v37_v35 = vld [vmem:[%s1546_s0 + $0x78] sm:$0xff] }
   0xb   :  { %345 = vmatpush.bf16.msra.mxu1 %v867_v21  ;;  %872 = vmatpush.bf16.msra.mxu2 %v867_v21  ;;  %v63_v31 = vpack.c.bf16 %v41_v30, %v40_v29  ;;  %v36_v34 = vld [vmem:[%s1546_s0 + $0x70] sm:$0xff]  ;;  %v42_v37 = vld [vmem:[%s1546_s0 + $0xa0] sm:$0xff]  ;;  %v43_v38 = vld [vmem:[%s1546_s0 + $0xa8] sm:$0xff] }
   0xc   :  { %v61_v36 = vpack.c.bf16 %v37_v35, %v36_v34  ;;  %v64_v39 = vpack.c.bf16 %v43_v38, %v42_v37  ;;  %v38_v40 = vld [vmem:[%s1546_s0 + $0x80] sm:$0xff]  ;;  %v39_v41 = vld [vmem:[%s1546_s0 + $0x88] sm:$0xff]  ;;  %v44_v44 = vld [vmem:[%s1546_s0 + $0xb0] sm:$0xff] }
   0xd   :  { %820 = vmatmul.msk.bf16.vlgmr.msra.gmra.mxu3 %vm90_vm0, %v63_v31  ;;  %v62_v42 = vpack.c.bf16 %v39_v41, %v38_v40  ;;  %v45_v45 = vld [vmem:[%s1546_s0 + $0xb8] sm:$0xff]  ;;  %v1186_v46 = vld [vmem:[%s1548_s2] ss:$0 sm:$0xff]  ;;  %v47_v56 = vld [vmem:[%s1546_s0 + $0xc8] sm:$0xff] }
   0xe   :  { %v65_v47 = vpack.c.bf16 %v45_v45, %v44_v44  ;;  %v46_v55 = vld [vmem:[%s1546_s0 + $0xc0] sm:$0xff]  ;;  %v48_v1 = vld [vmem:[%s1546_s0 + $0xd0] sm:$0xff]  ;;  %v49_v2 = vld [vmem:[%s1546_s0 + $0xd8] sm:$0xff] }
   0xf   :  { %346 = vmatpush.bf16.msra.mxu1 %v866_v22  ;;  %873 = vmatpush.bf16.msra.mxu2 %v866_v22  ;;  %v66_v57 = vpack.c.bf16 %v47_v56, %v46_v55  ;;  %v67_v3 = vpack.c.bf16 %v49_v2, %v48_v1  ;;  %v50_v11 = vld [vmem:[%s1546_s0 + $0xe0] sm:$0xff]  ;;  %v51_v12 = vld [vmem:[%s1546_s0 + $0xe8] sm:$0xff]  ;;  %v52_v21 = vld [vmem:[%s1546_s0 + $0xf0] sm:$0xff] }
  0x10   :  { %v53_v22 = vld [vmem:[%s1546_s0 + $0xf8] sm:$0xff] }
  0x13   :  { %347 = vmatpush.bf16.msra.mxu1 %v865_v23  ;;  %874 = vmatpush.bf16.msra.mxu2 %v865_v23  ;;  %v69_v23 = vpack.c.bf16 %v53_v22, %v52_v21 }
  0x17   :  { %348 = vmatpush.bf16.msra.mxu1 %v864_v26  ;;  %875 = vmatpush.bf16.msra.mxu2 %v864_v26 }
  0x19   :  { %812 = vmatmul.msk.bf16.gmra.mxu0 %vm90_vm0, %v55_v7 }
  0x1b   :  { %349 = vmatpush.bf16.msra.mxu1 %v863_v28  ;;  %876 = vmatpush.bf16.msra.mxu2 %v863_v28 }
  0x1d   :  { %821 = vmatmul.msk.bf16.gmra.mxu3 %vm90_vm0, %v64_v39 }
  0x1f   :  { %350 = vmatpush.bf16.msra.mxu1 %v862_v32  ;;  %877 = vmatpush.bf16.msra.mxu2 %v862_v32 }
  0x23   :  { %351 = vmatpush.bf16.msra.mxu1 %v861_v33  ;;  %878 = vmatpush.bf16.msra.mxu2 %v861_v33 }
  0x29   :  { %813 = vmatmul.msk.bf16.gmra.mxu0 %vm90_vm0, %v56_v10 }
  0x2d   :  { %822 = vmatmul.msk.bf16.gmra.mxu3 %vm90_vm0, %v65_v47 }
  0x39   :  { %814 = vmatmul.msk.bf16.gmra.mxu0 %vm90_vm0, %v57_v13  ;;  %v68_v13 = vpack.c.bf16 %v51_v12, %v50_v11 }
  0x3d   :  { %823 = vmatmul.msk.bf16.gmra.mxu3 %vm90_vm0, %v66_v57 }
  0x49   :  { %815 = vmatmul.msk.bf16.gmra.mxu0 %vm90_vm0, %v58_v16 }
  0x4d   :  { %824 = vmatmul.msk.bf16.gmra.mxu3 %vm90_vm0, %v67_v3 }
  0x59   :  { %816 = vmatmul.msk.bf16.gmra.mxu0 %vm90_vm0, %v59_v20 }
  0x5d   :  { %825 = vmatmul.msk.bf16.gmra.mxu3 %vm90_vm0, %v68_v13 }
  0x69   :  { %817 = vmatmul.msk.bf16.gmra.mxu0 %vm90_vm0, %v60_v27 }
  0x6d   :  { %826 = vmatmul.msk.bf16.gmra.mxu3 %vm90_vm0, %v69_v23 }
  0x79   :  { %818 = vmatmul.msk.bf16.gmra.mxu0 %vm90_vm0, %v61_v36 }
  0x86   :  { %v148_v43 = vpop.f32.mrf.mxu0 }
  0x87   :  { %v149_v48 = vadd.f32 %v1186_v46, %v148_v43 }
  0x89   :  { %819 = vmatmul.msk.bf16.gmra.mxu0 %vm90_vm0, %v62_v42  ;;  %v228_v51 = vmax.f32 %v149_v48, 0.0 }
  0x8e   :  { %v150_v49 = vpop.f32.mrf.mxu0 }
  0x8f   :  { %v151_v50 = vadd.f32 %v1186_v46, %v150_v49 }
  0x90   :  { %v193_v45 = vpop.f32.mrf.mxu3 }
  0x91   :  { %v229_v52 = vmax.f32 %v151_v50, 0.0  ;;  %v194_v3 = vadd.f32 %v1186_v46, %v193_v45 }
  0x93   :  { %v260_v53 = vpack.c.bf16 %v229_v52, %v228_v51 }
  0x95   :  { %352 = vmatmul.bf16.vlgmr.msra.gmra.mxu1 %v260_v53 }
  0x96   :  { %v153_v54 = vpop.f32.mrf.mxu0 }
  0x97   :  { %v154_v58 = vadd.f32 %v1186_v46, %v153_v54 }
  0x98   :  { %v195_v50 = vpop.f32.mrf.mxu3 }
  0x99   :  { %v230_v61 = vmax.f32 %v154_v58, 0.0 }
  0x9e   :  { %v155_v59 = vpop.f32.mrf.mxu0 }
  0x9f   :  { %v156_v60 = vadd.f32 %v1186_v46, %v155_v59  ;;  %v1239_v59 = vld [vmem:[%s1550_s4] ss:$0 sm:$0xff]  ;;  %s1038_s4 = smov [#allocation2]  }
  0xa0   :  { %v198_v55 = vpop.f32.mrf.mxu3  ;;  %s789_s25 = sshll.u32 %s1038_s4, 4  ;;  %s790_s25 = int_to_ptr.vmem [resolvable:$true] %s789_s25 }
  0xa1   :  { %v231_v62 = vmax.f32 %v156_v60, 0.0 }
  0xa3   :  { %v261_v63 = vpack.c.bf16 %v231_v62, %v230_v61 }
  0xa5   :  { %357 = vmatmul.bf16.gmra.mxu1 %v261_v63 }
  0xa6   :  { %v158_v0 = vpop.f32.mrf.mxu0 }
  0xa7   :  { %v159_v4 = vadd.f32 %v1186_v46, %v158_v0 }
  0xa8   :  { %v200_v1 = vpop.f32.mrf.mxu3 }
  0xa9   :  { %v232_v7 = vmax.f32 %v159_v4, 0.0  ;;  %v196_v4 = vadd.f32 %v1186_v46, %v195_v50 }
  0xae   :  { %v160_v5 = vpop.f32.mrf.mxu0 }
  0xaf   :  { %v161_v6 = vadd.f32 %v1186_v46, %v160_v5 }
  0xb1   :  { %v233_v8 = vmax.f32 %v161_v6, 0.0  ;;  %v203_v6 = vpop.f32.mrf.mxu3 }
  0xb3   :  { %v262_v9 = vpack.c.bf16 %v233_v8, %v232_v7  ;;  %v246_v7 = vmax.f32 %v194_v3, 0.0  ;;  %v247_v8 = vmax.f32 %v196_v4, 0.0 }
  0xb5   :  { %362 = vmatmul.bf16.gmra.mxu1 %v262_v9  ;;  %v269_v11 = vpack.c.bf16 %v247_v8, %v246_v7 }
  0xb6   :  { %v163_v10 = vpop.f32.mrf.mxu0 }
  0xb7   :  { %v164_v14 = vadd.f32 %v1186_v46, %v163_v10 }
  0xb9   :  { %v234_v17 = vmax.f32 %v164_v14, 0.0  ;;  %v205_v12 = vpop.f32.mrf.mxu3  ;;  %v199_v14 = vadd.f32 %v1186_v46, %v198_v55 }
  0xbe   :  { %v165_v15 = vpop.f32.mrf.mxu0 }
  0xbf   :  { %v166_v16 = vadd.f32 %v1186_v46, %v165_v15  ;;  %v201_v15 = vadd.f32 %v1186_v46, %v200_v1 }
  0xc1   :  { %v235_v18 = vmax.f32 %v166_v16, 0.0 }
  0xc3   :  { %v263_v19 = vpack.c.bf16 %v235_v18, %v234_v17  ;;  %v248_v17 = vmax.f32 %v199_v14, 0.0  ;;  %v249_v18 = vmax.f32 %v201_v15, 0.0 }
  0xc5   :  { %367 = vmatmul.bf16.gmra.mxu1 %v263_v19  ;;  %v270_v22 = vpack.c.bf16 %v249_v18, %v248_v17 }
  0xc6   :  { %v168_v20 = vpop.f32.mrf.mxu0 }
  0xc7   :  { %v169_v24 = vadd.f32 %v1186_v46, %v168_v20  ;;  %v208_v20 = vpop.f32.mrf.mxu3 }
  0xc9   :  { %v236_v27 = vmax.f32 %v169_v24, 0.0  ;;  %v204_v24 = vadd.f32 %v1186_v46, %v203_v6 }
  0xce   :  { %v170_v25 = vpop.f32.mrf.mxu0 }
  0xcf   :  { %v171_v26 = vadd.f32 %v1186_v46, %v170_v25  ;;  %v206_v25 = vadd.f32 %v1186_v46, %v205_v12 }
  0xd1   :  { %v237_v28 = vmax.f32 %v171_v26, 0.0 }
  0xd3   :  { %v264_v29 = vpack.c.bf16 %v237_v28, %v236_v27  ;;  %v210_v27 = vpop.f32.mrf.mxu3  ;;  %v250_v28 = vmax.f32 %v204_v24, 0.0 }
  0xd5   :  { %372 = vmatmul.bf16.gmra.mxu1 %v264_v29  ;;  %v251_v29 = vmax.f32 %v206_v25, 0.0 }
  0xd6   :  { %v173_v30 = vpop.f32.mrf.mxu0 }
  0xd7   :  { %v174_v31 = vadd.f32 %v1186_v46, %v173_v30 }
  0xd9   :  { %v238_v34 = vmax.f32 %v174_v31, 0.0 }
  0xde   :  { %v175_v32 = vpop.f32.mrf.mxu0 }
  0xdf   :  { %v176_v33 = vadd.f32 %v1186_v46, %v175_v32  ;;  %v271_v32 = vpack.c.bf16 %v251_v29, %v250_v28 }
  0xe1   :  { %v239_v35 = vmax.f32 %v176_v33, 0.0  ;;  %v213_v33 = vpop.f32.mrf.mxu3 }
  0xe3   :  { %v265_v36 = vpack.c.bf16 %v239_v35, %v238_v34  ;;  %v209_v35 = vadd.f32 %v1186_v46, %v208_v20 }
  0xe5   :  { %377 = vmatmul.bf16.gmra.mxu1 %v265_v36  ;;  %v211_v36 = vadd.f32 %v1186_v46, %v210_v27 }
  0xe6   :  { %v178_v37 = vpop.f32.mrf.mxu0 }
  0xe7   :  { %v179_v38 = vadd.f32 %v1186_v46, %v178_v37 }
  0xe9   :  { %v240_v41 = vmax.f32 %v179_v38, 0.0  ;;  %v252_v38 = vmax.f32 %v209_v35, 0.0 }
  0xee   :  { %v180_v39 = vpop.f32.mrf.mxu0 }
  0xef   :  { %v181_v40 = vadd.f32 %v1186_v46, %v180_v39  ;;  %v253_v39 = vmax.f32 %v211_v36, 0.0 }
  0xf1   :  { %v241_v42 = vmax.f32 %v181_v40, 0.0  ;;  %v215_v40 = vpop.f32.mrf.mxu3 }
  0xf3   :  { %v266_v43 = vpack.c.bf16 %v241_v42, %v240_v41 }
  0xf5   :  { %382 = vmatmul.bf16.gmra.mxu1 %v266_v43  ;;  %v272_v43 = vpack.c.bf16 %v253_v39, %v252_v38 }
  0xf6   :  { %v183_v44 = vpop.f32.mrf.mxu0 }
  0xf7   :  { %v184_v47 = vadd.f32 %v1186_v46, %v183_v44 }
  0xf9   :  { %v242_v51 = vmax.f32 %v184_v47, 0.0  ;;  %v218_v45 = vpop.f32.mrf.mxu3  ;;  %v214_v47 = vadd.f32 %v1186_v46, %v213_v33 }
  0xfb   :  { %v254_v50 = vmax.f32 %v214_v47, 0.0 }
  0xfe   :  { %v185_v48 = vpop.f32.mrf.mxu0 }
  0xff   :  { %v186_v49 = vadd.f32 %v1186_v46, %v185_v48  ;;  %v216_v48 = vadd.f32 %v1186_v46, %v215_v40 }
 0x101   :  { %v243_v52 = vmax.f32 %v186_v49, 0.0  ;;  %v220_v55 = vpop.f32.mrf.mxu3 }
 0x103   :  { %v267_v53 = vpack.c.bf16 %v243_v52, %v242_v51  ;;  %v255_v51 = vmax.f32 %v216_v48, 0.0 }
 0x105   :  { %387 = vmatmul.bf16.gmra.mxu1 %v267_v53 }
 0x106   :  { %v188_v54 = vpop.f32.mrf.mxu0 }
 0x107   :  { %v189_v56 = vadd.f32 %v1186_v46, %v188_v54  ;;  %v273_v54 = vpack.c.bf16 %v255_v51, %v254_v50 }
 0x109   :  { %v244_v60 = vmax.f32 %v189_v56, 0.0 }
 0x10e   :  { %v190_v57 = vpop.f32.mrf.mxu0 }
 0x10f   :  { %v191_v58 = vadd.f32 %v1186_v46, %v190_v57  ;;  %v219_v57 = vadd.f32 %v1186_v46, %v218_v45 }
 0x111   :  { %v245_v61 = vmax.f32 %v191_v58, 0.0  ;;  %v221_v58 = vadd.f32 %v1186_v46, %v220_v55 }
 0x112   :  { %v353_v62 = vpop.f32.mrf.mxu1 }
 0x113   :  { %v1242_v63 = vadd.f32 %v1239_v59, %v353_v62  ;;  %v268_v0 = vpack.c.bf16 %v245_v61, %v244_v60  ;;  %v223_v61 = vpop.f32.mrf.mxu3  ;;  %v256_v62 = vmax.f32 %v219_v57, 0.0 }
 0x114   :  { %v224_v7 = vadd.f32 %v1186_v46, %v223_v61 }
 0x115   :  { %392 = vmatmul.bf16.vlgmr.msra.gmra.mxu2 %v268_v0  ;;  %433 = vmax.xlane.f32.xlu0 %v1242_v63  ;;  %v257_v0 = vmax.f32 %v221_v58, 0.0 }
 0x117   :  { %v274_v3 = vpack.c.bf16 %v257_v0, %v256_v62 }
 0x11a   :  { %v355_v2 = vpop.f32.mrf.mxu1 }
 0x11b   :  { %v1248_v5 = vadd.f32 %v1239_v59, %v355_v2  ;;  %v225_v4 = vpop.f32.mrf.mxu3 }
 0x11c   :  { %v226_v8 = vadd.f32 %v1186_v46, %v225_v4 }
 0x11d   :  { %435 = vmax.xlane.f32.xlu0 %v1248_v5 }
 0x11e   :  { %v259_v12 = vmax.f32 %v226_v8, 0.0 }
 0x122   :  { %v358_v9 = vpop.f32.mrf.mxu1 }
 0x123   :  { %v1252_v10 = vadd.f32 %v1239_v59, %v358_v9 }
 0x125   :  { %397 = vmatmul.bf16.gmra.mxu2 %v269_v11  ;;  %437 = vmax.xlane.f32.xlu1 %v1252_v10  ;;  %v258_v11 = vmax.f32 %v224_v7, 0.0 }
 0x127   :  { %v275_v15 = vpack.c.bf16 %v259_v12, %v258_v11 }
 0x12a   :  { %v360_v13 = vpop.f32.mrf.mxu1 }
 0x12b   :  { %v1258_v16 = vadd.f32 %v1239_v59, %v360_v13 }
 0x12d   :  { %439 = vmax.xlane.f32.xlu1 %v1258_v16 }
 0x132   :  { %v363_v19 = vpop.f32.mrf.mxu1 }
 0x133   :  { %v1262_v21 = vadd.f32 %v1239_v59, %v363_v19 }
 0x135   :  { %402 = vmatmul.bf16.gmra.mxu2 %v270_v22  ;;  %441 = vmax.xlane.f32.xlu2 %v1262_v21 }
 0x13a   :  { %v365_v23 = vpop.f32.mrf.mxu1 }
 0x13b   :  { %v1268_v26 = vadd.f32 %v1239_v59, %v365_v23 }
 0x13d   :  { %443 = vmax.xlane.f32.xlu2 %v1268_v26 }
 0x142   :  { %v368_v30 = vpop.f32.mrf.mxu1 }
 0x143   :  { %v1272_v31 = vadd.f32 %v1239_v59, %v368_v30 }
 0x145   :  { %407 = vmatmul.bf16.gmra.mxu2 %v271_v32  ;;  %445 = vmax.xlane.f32.xlu0 %v1272_v31 }
 0x14a   :  { %v370_v34 = vpop.f32.mrf.mxu1 }
 0x14b   :  { %v1278_v37 = vadd.f32 %v1239_v59, %v370_v34 }
 0x14d   :  { %447 = vmax.xlane.f32.xlu1 %v1278_v37 }
 0x152   :  { %v373_v41 = vpop.f32.mrf.mxu1 }
 0x153   :  { %v1282_v42 = vadd.f32 %v1239_v59, %v373_v41 }
 0x155   :  { %412 = vmatmul.bf16.gmra.mxu2 %v272_v43  ;;  %449 = vmax.xlane.f32.xlu2 %v1282_v42 }
 0x15a   :  { %v375_v44 = vpop.f32.mrf.mxu1 }
 0x15b   :  { %v1288_v49 = vadd.f32 %v1239_v59, %v375_v44 }
 0x15d   :  { %451 = vmax.xlane.f32.xlu0 %v1288_v49 }
 0x162   :  { %v378_v52 = vpop.f32.mrf.mxu1 }
 0x163   :  { %v1292_v53 = vadd.f32 %v1239_v59, %v378_v52 }
 0x165   :  { %417 = vmatmul.bf16.gmra.mxu2 %v273_v54  ;;  %453 = vmax.xlane.f32.xlu1 %v1292_v53 }
 0x16a   :  { %v380_v56 = vpop.f32.mrf.mxu1 }
 0x16b   :  { %v1298_v60 = vadd.f32 %v1239_v59, %v380_v56 }
 0x16d   :  { %455 = vmax.xlane.f32.xlu2 %v1298_v60 }
 0x172   :  { %v383_v1 = vpop.f32.mrf.mxu1 }
 0x173   :  { %v1302_v2 = vadd.f32 %v1239_v59, %v383_v1 }
 0x175   :  { %422 = vmatmul.bf16.gmra.mxu2 %v274_v3  ;;  %457 = vmax.xlane.f32.xlu0 %v1302_v2 }
 0x17a   :  { %v385_v6 = vpop.f32.mrf.mxu1 }
 0x17b   :  { %v1308_v9 = vadd.f32 %v1239_v59, %v385_v6 }
 0x17d   :  { %459 = vmax.xlane.f32.xlu1 %v1308_v9 }
 0x182   :  { %v388_v13 = vpop.f32.mrf.mxu1 }
 0x183   :  { %v1312_v14 = vadd.f32 %v1239_v59, %v388_v13 }
 0x185   :  { %427 = vmatmul.bf16.gmra.mxu2 %v275_v15  ;;  %461 = vmax.xlane.f32.xlu2 %v1312_v14 }
 0x188   :  { %v434_v17 = vpop.xlane.xlu0 %433 }
 0x189   :  { %v1316_v18 = vsub.f32 %v1242_v63, %v434_v17 }
 0x18a   :  { %v390_v46 = vpop.f32.mrf.mxu1 }
 0x18b   :  { %v529_v19 = vmul.f32 1.442695, %v1316_v18  ;;  %v1320_v20 = vadd.f32 %v1239_v59, %v390_v46 }
 0x18d   :  { %884 = vpow2.f32 %v529_v19  ;;  %463 = vmax.xlane.f32.xlu0 %v1320_v20 }
 0x190   :  { %v436_v22 = vpop.xlane.xlu0 %435 }
 0x191   :  { %v1324_v23 = vsub.f32 %v1248_v5, %v436_v22 }
 0x193   :  { %v885_v24 = vpop.eup %884  ;;  %v531_v25 = vmul.f32 1.442695, %v1324_v23 }
 0x194   :  { %593 = vadd.xlane.f32.xlu2 %v885_v24 }
 0x195   :  { %886 = vpow2.f32 %v531_v25 }
 0x198   :  { %v393_v63 = vpop.f32.mrf.mxu2  ;;  %v438_v27 = vpop.xlane.xlu1 %437 }
 0x199   :  { %v1328_v28 = vadd.f32 %v1239_v59, %v393_v63  ;;  %v1331_v29 = vsub.f32 %v1252_v10, %v438_v27 }
 0x19b   :  { %v887_v30 = vpop.eup %886  ;;  %v533_v32 = vmul.f32 1.442695, %v1331_v29  ;;  %465 = vmax.xlane.f32.xlu1 %v1328_v28 }
 0x19c   :  { %595 = vadd.xlane.f32.xlu0 %v887_v30 }
 0x19d   :  { %888 = vpow2.f32 %v533_v32 }
 0x1a0   :  { %v395_v5 = vpop.f32.mrf.mxu2  ;;  %v440_v33 = vpop.xlane.xlu1 %439 }
 0x1a1   :  { %v1336_v34 = vadd.f32 %v1239_v59, %v395_v5  ;;  %v1339_v35 = vsub.f32 %v1258_v16, %v440_v33 }
 0x1a3   :  { %v889_v36 = vpop.eup %888  ;;  %v535_v38 = vmul.f32 1.442695, %v1339_v35  ;;  %467 = vmax.xlane.f32.xlu2 %v1336_v34 }
 0x1a4   :  { %597 = vadd.xlane.f32.xlu1 %v889_v36 }
 0x1a5   :  { %890 = vpow2.f32 %v535_v38 }
 0x1a8   :  { %v398_v10 = vpop.f32.mrf.mxu2  ;;  %v442_v39 = vpop.xlane.xlu2 %441 }
 0x1a9   :  { %v1344_v40 = vadd.f32 %v1239_v59, %v398_v10  ;;  %v1347_v41 = vsub.f32 %v1262_v21, %v442_v39 }
 0x1ab   :  { %v891_v43 = vpop.eup %890  ;;  %v537_v44 = vmul.f32 1.442695, %v1347_v41  ;;  %469 = vmax.xlane.f32.xlu0 %v1344_v40 }
 0x1ac   :  { %599 = vadd.xlane.f32.xlu2 %v891_v43 }
 0x1ad   :  { %892 = vpow2.f32 %v537_v44 }
 0x1b0   :  { %v400_v16 = vpop.f32.mrf.mxu2  ;;  %v444_v45 = vpop.xlane.xlu2 %443 }
 0x1b1   :  { %v1352_v47 = vadd.f32 %v1239_v59, %v400_v16  ;;  %v1355_v48 = vsub.f32 %v1268_v26, %v444_v45 }
 0x1b3   :  { %v893_v50 = vpop.eup %892  ;;  %v539_v51 = vmul.f32 1.442695, %v1355_v48  ;;  %471 = vmax.xlane.f32.xlu1 %v1352_v47 }
 0x1b4   :  { %601 = vadd.xlane.f32.xlu0 %v893_v50 }
 0x1b5   :  { %894 = vpow2.f32 %v539_v51 }
 0x1b8   :  { %v403_v21 = vpop.f32.mrf.mxu2  ;;  %v446_v52 = vpop.xlane.xlu0 %445 }
 0x1b9   :  { %v1360_v54 = vadd.f32 %v1239_v59, %v403_v21  ;;  %v1363_v55 = vsub.f32 %v1272_v31, %v446_v52 }
 0x1bb   :  { %v895_v56 = vpop.eup %894  ;;  %v541_v57 = vmul.f32 1.442695, %v1363_v55  ;;  %473 = vmax.xlane.f32.xlu2 %v1360_v54 }
 0x1bc   :  { %603 = vadd.xlane.f32.xlu1 %v895_v56 }
 0x1bd   :  { %896 = vpow2.f32 %v541_v57 }
 0x1c0   :  { %v405_v26 = vpop.f32.mrf.mxu2  ;;  %v448_v58 = vpop.xlane.xlu1 %447 }
 0x1c1   :  { %v1368_v61 = vadd.f32 %v1239_v59, %v405_v26  ;;  %v1371_v62 = vsub.f32 %v1278_v37, %v448_v58 }
 0x1c3   :  { %v897_v0 = vpop.eup %896  ;;  %v543_v1 = vmul.f32 1.442695, %v1371_v62  ;;  %475 = vmax.xlane.f32.xlu0 %v1368_v61 }
 0x1c4   :  { %605 = vadd.xlane.f32.xlu2 %v897_v0 }
 0x1c5   :  { %898 = vpow2.f32 %v543_v1 }
 0x1c8   :  { %v408_v31 = vpop.f32.mrf.mxu2  ;;  %v450_v3 = vpop.xlane.xlu2 %449 }
 0x1c9   :  { %v1376_v4 = vadd.f32 %v1239_v59, %v408_v31  ;;  %v1379_v6 = vsub.f32 %v1282_v42, %v450_v3 }
 0x1cb   :  { %v899_v7 = vpop.eup %898  ;;  %v545_v8 = vmul.f32 1.442695, %v1379_v6  ;;  %477 = vmax.xlane.f32.xlu1 %v1376_v4 }
 0x1cc   :  { %607 = vadd.xlane.f32.xlu0 %v899_v7 }
 0x1cd   :  { %900 = vpow2.f32 %v545_v8 }
 0x1d0   :  { %v410_v37 = vpop.f32.mrf.mxu2  ;;  %v452_v11 = vpop.xlane.xlu0 %451 }
 0x1d1   :  { %v1384_v12 = vadd.f32 %v1239_v59, %v410_v37  ;;  %v1387_v13 = vsub.f32 %v1288_v49, %v452_v11 }
 0x1d3   :  { %v901_v15 = vpop.eup %900  ;;  %v547_v17 = vmul.f32 1.442695, %v1387_v13  ;;  %479 = vmax.xlane.f32.xlu2 %v1384_v12 }
 0x1d4   :  { %609 = vadd.xlane.f32.xlu1 %v901_v15 }
 0x1d5   :  { %902 = vpow2.f32 %v547_v17 }
 0x1d8   :  { %v413_v42 = vpop.f32.mrf.mxu2  ;;  %v454_v46 = vpop.xlane.xlu1 %453 }
 0x1d9   :  { %v1392_v19 = vadd.f32 %v1239_v59, %v413_v42  ;;  %v1395_v22 = vsub.f32 %v1292_v53, %v454_v46 }
 0x1db   :  { %v903_v24 = vpop.eup %902  ;;  %v549_v25 = vmul.f32 1.442695, %v1395_v22  ;;  %481 = vmax.xlane.f32.xlu0 %v1392_v19 }
 0x1dc   :  { %611 = vadd.xlane.f32.xlu2 %v903_v24 }
 0x1dd   :  { %904 = vpow2.f32 %v549_v25 }
 0x1e0   :  { %v415_v49 = vpop.f32.mrf.mxu2  ;;  %v456_v33 = vpop.xlane.xlu2 %455 }
 0x1e1   :  { %v1400_v63 = vadd.f32 %v1239_v59, %v415_v49 }
 0x1e3   :  { %v905_v27 = vpop.eup %904  ;;  %483 = vmax.xlane.f32.xlu1 %v1400_v63 }
 0x1e4   :  { %613 = vadd.xlane.f32.xlu0 %v905_v27 }
 0x1e8   :  { %v418_v30 = vpop.f32.mrf.mxu2  ;;  %v458_v38 = vpop.xlane.xlu0 %457 }
 0x1e9   :  { %v1404_v32 = vadd.f32 %v1239_v59, %v418_v30  ;;  %v1416_v39 = vsub.f32 %v1302_v2, %v458_v38 }
 0x1eb   :  { %485 = vmax.xlane.f32.xlu2 %v1404_v32  ;;  %v553_v44 = vmul.f32 1.442695, %v1416_v39 }
 0x1ed   :  { %906 = vpow2.f32 %v553_v44 }
 0x1f0   :  { %v420_v53 = vpop.f32.mrf.mxu2  ;;  %v460_v45 = vpop.xlane.xlu1 %459 }
 0x1f1   :  { %v1408_v5 = vadd.f32 %v1239_v59, %v420_v53  ;;  %v1424_v21 = vsub.f32 %v1308_v9, %v460_v45  ;;  %v1436_v9 = vsub.f32 %v1298_v60, %v456_v33 }
 0x1f3   :  { %487 = vmax.xlane.f32.xlu0 %v1408_v5  ;;  %v555_v56 = vmul.f32 1.442695, %v1424_v21  ;;  %v907_v0 = vpop.eup %906  ;;  %v551_v8 = vmul.f32 1.442695, %v1436_v9 }
 0x1f8   :  { %v423_v36 = vpop.f32.mrf.mxu2  ;;  %v462_v43 = vpop.xlane.xlu2 %461 }
 0x1f9   :  { %v1412_v10 = vadd.f32 %v1239_v59, %v423_v36 }
 0x1fb   :  { %489 = vmax.xlane.f32.xlu1 %v1412_v10 }
 0x200   :  { %v425_v16 = vpop.f32.mrf.mxu2  ;;  %v464_v51 = vpop.xlane.xlu0 %463 }
 0x201   :  { %v1420_v50 = vadd.f32 %v1239_v59, %v425_v16  ;;  %v1427_v52 = vsub.f32 %v1320_v20, %v464_v51 }
 0x203   :  { %491 = vmax.xlane.f32.xlu2 %v1420_v50  ;;  %v559_v26 = vmul.f32 1.442695, %v1427_v52 }
 0x207   :  { %v594_v2 = vpop.xlane.xlu2 %593 }
 0x208   :  { %908 = vlog2.f32 %v594_v2  ;;  %v428_v57 = vpop.f32.mrf.mxu2 }
 0x209   :  { %v1432_v58 = vadd.f32 %v1239_v59, %v428_v57  ;;  %910 = vpow2.f32 %v555_v56 }
 0x20a   :  { %912 = vpow2.f32 %v559_v26 }
 0x20b   :  { %493 = vmax.xlane.f32.xlu0 %v1432_v58  ;;  %617 = vadd.xlane.f32.xlu2 %v907_v0 }
 0x20e   :  { %v909_v20 = vpop.eup %908  ;;  %v466_v1 = vpop.xlane.xlu1 %465 }
 0x20f   :  { %v658_v31 = vmul.f32 0.6931472, %v909_v20  ;;  %v1439_v3 = vsub.f32 %v1328_v28, %v466_v1  ;;  %v596_v7 = vpop.xlane.xlu0 %595  ;;  %v911_v17 = vpop.eup %910  ;;  %v1449_v28 = vsub.f32 %v1312_v14, %v462_v43 }
 0x210   :  { %914 = vlog2.f32 %v596_v7  ;;  %v430_v37 = vpop.f32.mrf.mxu2  ;;  %v913_v42 = vpop.eup %912 }
 0x211   :  { %v721_v11 = vsub.f32 %v1316_v18, %v658_v31  ;;  %v561_v15 = vmul.f32 1.442695, %v1439_v3  ;;  %v1445_v60 = vadd.f32 %v1239_v59, %v430_v37  ;;  %v557_v49 = vmul.f32 1.442695, %v1449_v28 }
 0x213   :  { %753 = vst [vmem:[#allocation2] sm:$0xff] %v721_v11  ;;  %916 = vpow2.f32 %v561_v15  ;;  %495 = vmax.xlane.f32.xlu1 %v1445_v60  ;;  %619 = vadd.xlane.f32.xlu0 %v911_v17 }
 0x214   :  { %918 = vpow2.f32 %v551_v8  ;;  %623 = vadd.xlane.f32.xlu2 %v913_v42 }
 0x216   :  { %v915_v46 = vpop.eup %914  ;;  %v468_v24 = vpop.xlane.xlu2 %467 }
 0x217   :  { %v660_v18 = vmul.f32 0.6931472, %v915_v46  ;;  %v598_v25 = vpop.xlane.xlu1 %597  ;;  %v1454_v53 = vsub.f32 %v1336_v34, %v468_v24 }
 0x218   :  { %920 = vlog2.f32 %v598_v25 }
 0x219   :  { %v917_v59 = vpop.eup %916  ;;  %v722_v27 = vsub.f32 %v1324_v23, %v660_v18  ;;  %922 = vpow2.f32 %v557_v49  ;;  %v563_v44 = vmul.f32 1.442695, %v1454_v53 }
 0x21a   :  { %v919_v30 = vpop.eup %918 }
 0x21b   :  { %754 = vst [vmem:[#allocation2 + $0x8] sm:$0xff] %v722_v27  ;;  %615 = vadd.xlane.f32.xlu1 %v919_v30  ;;  %625 = vadd.xlane.f32.xlu0 %v917_v59 }
 0x21e   :  { %v921_v14 = vpop.eup %920  ;;  %v470_v33 = vpop.xlane.xlu0 %469 }
 0x21f   :  { %v662_v36 = vmul.f32 0.6931472, %v921_v14  ;;  %v1457_v38 = vsub.f32 %v1344_v40, %v470_v33  ;;  %v600_v43 = vpop.xlane.xlu2 %599  ;;  %v923_v45 = vpop.eup %922 }
 0x220   :  { %924 = vlog2.f32 %v600_v43 }
 0x221   :  { %v723_v23 = vsub.f32 %v1331_v29, %v662_v36  ;;  %v565_v16 = vmul.f32 1.442695, %v1457_v38 }
 0x223   :  { %755 = vst [vmem:[#allocation2 + $0x10] sm:$0xff] %v723_v23  ;;  %926 = vpow2.f32 %v565_v16  ;;  %621 = vadd.xlane.f32.xlu1 %v923_v45 }
 0x224   :  { %928 = vpow2.f32 %v563_v44 }
 0x226   :  { %v925_v34 = vpop.eup %924  ;;  %v472_v51 = vpop.xlane.xlu1 %471 }
 0x227   :  { %v664_v2 = vmul.f32 0.6931472, %v925_v34  ;;  %v1463_v56 = vsub.f32 %v1352_v47, %v472_v51  ;;  %v602_v40 = vpop.xlane.xlu0 %601 }
 0x228   :  { %930 = vlog2.f32 %v602_v40 }
 0x229   :  { %v927_v57 = vpop.eup %926  ;;  %v724_v26 = vsub.f32 %v1339_v35, %v664_v2  ;;  %v567_v29 = vmul.f32 1.442695, %v1463_v56 }
 0x22a   :  { %v929_v0 = vpop.eup %928  ;;  %629 = vadd.xlane.f32.xlu2 %v927_v57 }
 0x22b   :  { %756 = vst [vmem:[#allocation2 + $0x18] sm:$0xff] %v724_v26  ;;  %932 = vpow2.f32 %v567_v29  ;;  %627 = vadd.xlane.f32.xlu1 %v929_v0 }
 0x22e   :  { %v931_v20 = vpop.eup %930  ;;  %v474_v1 = vpop.xlane.xlu2 %473 }
 0x22f   :  { %v666_v31 = vmul.f32 0.6931472, %v931_v20  ;;  %v1468_v7 = vsub.f32 %v1360_v54, %v474_v1  ;;  %v604_v47 = vpop.xlane.xlu1 %603 }
 0x230   :  { %934 = vlog2.f32 %v604_v47 }
 0x231   :  { %v933_v8 = vpop.eup %932  ;;  %v725_v37 = vsub.f32 %v1347_v41, %v666_v31  ;;  %v569_v35 = vmul.f32 1.442695, %v1468_v7 }
 0x232   :  { %631 = vadd.xlane.f32.xlu0 %v933_v8 }
 0x233   :  { %757 = vst [vmem:[#allocation2 + $0x20] sm:$0xff] %v725_v37  ;;  %936 = vpow2.f32 %v569_v35 }
 0x236   :  { %v935_v11 = vpop.eup %934  ;;  %v476_v15 = vpop.xlane.xlu0 %475 }
 0x237   :  { %v668_v17 = vmul.f32 0.6931472, %v935_v11  ;;  %v1473_v42 = vsub.f32 %v1368_v61, %v476_v15  ;;  %v606_v46 = vpop.xlane.xlu2 %605 }
 0x238   :  { %938 = vlog2.f32 %v606_v46 }
 0x239   :  { %v937_v54 = vpop.eup %936  ;;  %v726_v24 = vsub.f32 %v1355_v48, %v668_v17  ;;  %v571_v18 = vmul.f32 1.442695, %v1473_v42 }
 0x23a   :  { %633 = vadd.xlane.f32.xlu1 %v937_v54 }
 0x23b   :  { %758 = vst [vmem:[#allocation2 + $0x28] sm:$0xff] %v726_v24  ;;  %940 = vpow2.f32 %v571_v18 }
 0x23e   :  { %v939_v41 = vpop.eup %938  ;;  %v478_v25 = vpop.xlane.xlu1 %477 }
 0x23f   :  { %v670_v49 = vmul.f32 0.6931472, %v939_v41  ;;  %v1478_v59 = vsub.f32 %v1376_v4, %v478_v25  ;;  %v608_v27 = vpop.xlane.xlu0 %607 }
 0x240   :  { %942 = vlog2.f32 %v608_v27 }
 0x241   :  { %v941_v61 = vpop.eup %940  ;;  %v727_v30 = vsub.f32 %v1363_v55, %v670_v49  ;;  %v573_v14 = vmul.f32 1.442695, %v1478_v59 }
 0x242   :  { %635 = vadd.xlane.f32.xlu2 %v941_v61 }
 0x243   :  { %759 = vst [vmem:[#allocation2 + $0x30] sm:$0xff] %v727_v30  ;;  %944 = vpow2.f32 %v573_v14 }
 0x246   :  { %v943_v48 = vpop.eup %942  ;;  %v480_v33 = vpop.xlane.xlu2 %479 }
 0x247   :  { %v672_v36 = vmul.f32 0.6931472, %v943_v48  ;;  %v1483_v43 = vsub.f32 %v1384_v12, %v480_v33  ;;  %v610_v44 = vpop.xlane.xlu1 %609 }
 0x248   :  { %946 = vlog2.f32 %v610_v44 }
 0x249   :  { %v945_v4 = vpop.eup %944  ;;  %v728_v23 = vsub.f32 %v1371_v62, %v672_v36  ;;  %v575_v16 = vmul.f32 1.442695, %v1483_v43 }
 0x24a   :  { %637 = vadd.xlane.f32.xlu0 %v945_v4 }
 0x24b   :  { %760 = vst [vmem:[#allocation2 + $0x38] sm:$0xff] %v728_v23  ;;  %948 = vpow2.f32 %v575_v16 }
 0x24e   :  { %v947_v55 = vpop.eup %946  ;;  %v482_v45 = vpop.xlane.xlu0 %481 }
 0x24f   :  { %v674_v34 = vmul.f32 0.6931472, %v947_v55  ;;  %v1488_v51 = vsub.f32 %v1392_v19, %v482_v45  ;;  %v612_v2 = vpop.xlane.xlu2 %611 }
 0x250   :  { %950 = vlog2.f32 %v612_v2 }
 0x251   :  { %v949_v12 = vpop.eup %948  ;;  %v729_v40 = vsub.f32 %v1379_v6, %v674_v34  ;;  %v577_v57 = vmul.f32 1.442695, %v1488_v51 }
 0x252   :  { %639 = vadd.xlane.f32.xlu1 %v949_v12 }
 0x253   :  { %761 = vst [vmem:[#allocation2 + $0x40] sm:$0xff] %v729_v40  ;;  %952 = vpow2.f32 %v577_v57 }
 0x256   :  { %v951_v62 = vpop.eup %950  ;;  %v484_v26 = vpop.xlane.xlu1 %483 }
 0x257   :  { %v676_v29 = vmul.f32 0.6931472, %v951_v62  ;;  %v1493_v0 = vsub.f32 %v1400_v63, %v484_v26  ;;  %v614_v20 = vpop.xlane.xlu0 %613 }
 0x258   :  { %954 = vlog2.f32 %v614_v20 }
 0x259   :  { %v953_v19 = vpop.eup %952  ;;  %v730_v1 = vsub.f32 %v1387_v13, %v676_v29  ;;  %v579_v31 = vmul.f32 1.442695, %v1493_v0 }
 0x25a   :  { %641 = vadd.xlane.f32.xlu2 %v953_v19 }
 0x25b   :  { %762 = vst [vmem:[#allocation2 + $0x48] sm:$0xff] %v730_v1  ;;  %956 = vpow2.f32 %v579_v31 }
 0x25e   :  { %v955_v6 = vpop.eup %954  ;;  %v486_v47 = vpop.xlane.xlu2 %485 }
 0x25f   :  { %v678_v8 = vmul.f32 0.6931472, %v955_v6  ;;  %v1498_v37 = vsub.f32 %v1404_v32, %v486_v47 }
 0x261   :  { %v957_v35 = vpop.eup %956  ;;  %v731_v63 = vsub.f32 %v1395_v22, %v678_v8  ;;  %v581_v11 = vmul.f32 1.442695, %v1498_v37 }
 0x262   :  { %643 = vadd.xlane.f32.xlu0 %v957_v35 }
 0x263   :  { %763 = vst [vmem:[#allocation2 + $0x50] sm:$0xff] %v731_v63  ;;  %958 = vpow2.f32 %v581_v11 }
 0x266   :  { %v488_v13 = vpop.xlane.xlu0 %487 }
 0x267   :  { %v1503_v15 = vsub.f32 %v1408_v5, %v488_v13 }
 0x269   :  { %v959_v17 = vpop.eup %958  ;;  %v583_v46 = vmul.f32 1.442695, %v1503_v15 }
 0x26a   :  { %645 = vadd.xlane.f32.xlu1 %v959_v17 }
 0x26b   :  { %960 = vpow2.f32 %v583_v46 }
 0x26e   :  { %v490_v54 = vpop.xlane.xlu1 %489 }
 0x26f   :  { %v1507_v32 = vsub.f32 %v1412_v10, %v490_v54 }
 0x271   :  { %v961_v24 = vpop.eup %960  ;;  %v585_v22 = vmul.f32 1.442695, %v1507_v32 }
 0x272   :  { %647 = vadd.xlane.f32.xlu2 %v961_v24 }
 0x273   :  { %962 = vpow2.f32 %v585_v22 }
 0x276   :  { %v492_v18 = vpop.xlane.xlu2 %491 }
 0x277   :  { %v1511_v41 = vsub.f32 %v1420_v50, %v492_v18 }
 0x279   :  { %v963_v5 = vpop.eup %962  ;;  %v587_v25 = vmul.f32 1.442695, %v1511_v41 }
 0x27a   :  { %649 = vadd.xlane.f32.xlu0 %v963_v5 }
 0x27b   :  { %964 = vpow2.f32 %v587_v25 }
 0x27e   :  { %v618_v49 = vpop.xlane.xlu2 %617  ;;  %v494_v27 = vpop.xlane.xlu0 %493 }
 0x27f   :  { %966 = vlog2.f32 %v618_v49  ;;  %v1515_v10 = vsub.f32 %v1432_v58, %v494_v27 }
 0x281   :  { %v965_v61 = vpop.eup %964  ;;  %v589_v30 = vmul.f32 1.442695, %v1515_v10 }
 0x282   :  { %651 = vadd.xlane.f32.xlu1 %v965_v61 }
 0x283   :  { %968 = vpow2.f32 %v589_v30 }
 0x285   :  { %v967_v14 = vpop.eup %966 }
 0x286   :  { %v682_v48 = vmul.f32 0.6931472, %v967_v14  ;;  %v496_v50 = vpop.xlane.xlu1 %495  ;;  %v620_v33 = vpop.xlane.xlu0 %619 }
 0x287   :  { %v1519_v36 = vsub.f32 %v1445_v60, %v496_v50  ;;  %v624_v44 = vpop.xlane.xlu2 %623  ;;  %970 = vlog2.f32 %v620_v33 }
 0x288   :  { %v733_v4 = vsub.f32 %v1416_v39, %v682_v48  ;;  %972 = vlog2.f32 %v624_v44 }
 0x289   :  { %v969_v23 = vpop.eup %968  ;;  %v591_v58 = vmul.f32 1.442695, %v1519_v36 }
 0x28a   :  { %765 = vst [vmem:[#allocation2 + $0x60] sm:$0xff] %v733_v4  ;;  %653 = vadd.xlane.f32.xlu2 %v969_v23 }
 0x28b   :  { %974 = vpow2.f32 %v591_v58 }
 0x28d   :  { %v971_v16 = vpop.eup %970 }
 0x28e   :  { %v973_v55 = vpop.eup %972  ;;  %v684_v45 = vmul.f32 0.6931472, %v971_v16  ;;  %v616_v34 = vpop.xlane.xlu1 %615 }
 0x28f   :  { %v626_v2 = vpop.xlane.xlu0 %625  ;;  %v688_v12 = vmul.f32 0.6931472, %v973_v55  ;;  %976 = vlog2.f32 %v616_v34 }
 0x290   :  { %v734_v60 = vsub.f32 %v1424_v21, %v684_v45  ;;  %978 = vlog2.f32 %v626_v2 }
 0x291   :  { %v975_v40 = vpop.eup %974  ;;  %v736_v39 = vsub.f32 %v1427_v52, %v688_v12 }
 0x292   :  { %766 = vst [vmem:[#allocation2 + $0x68] sm:$0xff] %v734_v60  ;;  %655 = vadd.xlane.f32.xlu0 %v975_v40 }
 0x293   :  { %768 = vst [vmem:[#allocation2 + $0x78] sm:$0xff] %v736_v39 }
 0x295   :  { %v977_v57 = vpop.eup %976 }
 0x296   :  { %v979_v62 = vpop.eup %978  ;;  %v680_v26 = vmul.f32 0.6931472, %v977_v57  ;;  %v622_v29 = vpop.xlane.xlu1 %621 }
 0x297   :  { %v690_v20 = vmul.f32 0.6931472, %v979_v62  ;;  %980 = vlog2.f32 %v622_v29 }
 0x298   :  { %v732_v19 = vsub.f32 %v1436_v9, %v680_v26 }
 0x299   :  { %v737_v1 = vsub.f32 %v1439_v3, %v690_v20 }
 0x29a   :  { %764 = vst [vmem:[#allocation2 + $0x58] sm:$0xff] %v732_v19 }
 0x29b   :  { %769 = vst [vmem:[#allocation2 + $0x80] sm:$0xff] %v737_v1 }
 0x29d   :  { %v981_v21 = vpop.eup %980  ;;  %v630_v31 = vpop.xlane.xlu2 %629 }
 0x29e   :  { %v686_v6 = vmul.f32 0.6931472, %v981_v21  ;;  %982 = vlog2.f32 %v630_v31  ;;  %v628_v52 = vpop.xlane.xlu1 %627 }
 0x29f   :  { %984 = vlog2.f32 %v628_v52 }
 0x2a0   :  { %v735_v47 = vsub.f32 %v1449_v28, %v686_v6 }
 0x2a2   :  { %767 = vst [vmem:[#allocation2 + $0x70] sm:$0xff] %v735_v47 }
 0x2a4   :  { %v983_v8 = vpop.eup %982 }
 0x2a5   :  { %v985_v35 = vpop.eup %984  ;;  %v694_v63 = vmul.f32 0.6931472, %v983_v8  ;;  %v632_v11 = vpop.xlane.xlu0 %631 }
 0x2a6   :  { %v692_v13 = vmul.f32 0.6931472, %v985_v35  ;;  %986 = vlog2.f32 %v632_v11 }
 0x2a7   :  { %v739_v9 = vsub.f32 %v1457_v38, %v694_v63 }
 0x2a8   :  { %v738_v3 = vsub.f32 %v1454_v53, %v692_v13 }
 0x2a9   :  { %771 = vst [vmem:[#allocation2 + $0x90] sm:$0xff] %v739_v9 }
 0x2aa   :  { %770 = vst [vmem:[#allocation2 + $0x88] sm:$0xff] %v738_v3 }
 0x2ac   :  { %v987_v17 = vpop.eup %986 }
 0x2ad   :  { %v696_v46 = vmul.f32 0.6931472, %v987_v17  ;;  %v634_v54 = vpop.xlane.xlu1 %633 }
 0x2ae   :  { %988 = vlog2.f32 %v634_v54 }
 0x2af   :  { %v740_v24 = vsub.f32 %v1463_v56, %v696_v46 }
 0x2b1   :  { %772 = vst [vmem:[#allocation2 + $0x98] sm:$0xff] %v740_v24 }
 0x2b4   :  { %v989_v28 = vpop.eup %988 }
 0x2b5   :  { %v698_v22 = vmul.f32 0.6931472, %v989_v28  ;;  %v636_v18 = vpop.xlane.xlu2 %635 }
 0x2b6   :  { %990 = vlog2.f32 %v636_v18 }
 0x2b7   :  { %v741_v5 = vsub.f32 %v1468_v7, %v698_v22 }
 0x2b9   :  { %773 = vst [vmem:[#allocation2 + $0xa0] sm:$0xff] %v741_v5 }
 0x2bc   :  { %v991_v25 = vpop.eup %990 }
 0x2bd   :  { %v700_v38 = vmul.f32 0.6931472, %v991_v25  ;;  %v638_v49 = vpop.xlane.xlu0 %637 }
 0x2be   :  { %992 = vlog2.f32 %v638_v49 }
 0x2bf   :  { %v742_v53 = vsub.f32 %v1473_v42, %v700_v38 }
 0x2c1   :  { %774 = vst [vmem:[#allocation2 + $0xa8] sm:$0xff] %v742_v53 }
 0x2c4   :  { %v993_v27 = vpop.eup %992 }
 0x2c5   :  { %v702_v61 = vmul.f32 0.6931472, %v993_v27  ;;  %v640_v30 = vpop.xlane.xlu1 %639 }
 0x2c6   :  { %994 = vlog2.f32 %v640_v30 }
 0x2c7   :  { %v743_v56 = vsub.f32 %v1478_v59, %v702_v61 }
 0x2c9   :  { %775 = vst [vmem:[#allocation2 + $0xb0] sm:$0xff] %v743_v56 }
 0x2cc   :  { %v995_v14 = vpop.eup %994 }
 0x2cd   :  { %v704_v48 = vmul.f32 0.6931472, %v995_v14  ;;  %v642_v50 = vpop.xlane.xlu2 %641 }
 0x2ce   :  { %996 = vlog2.f32 %v642_v50 }
 0x2cf   :  { %v744_v7 = vsub.f32 %v1483_v43, %v704_v48 }
 0x2d1   :  { %776 = vst [vmem:[#allocation2 + $0xb8] sm:$0xff] %v744_v7 }
 0x2d4   :  { %v997_v33 = vpop.eup %996 }
 0x2d5   :  { %v706_v44 = vmul.f32 0.6931472, %v997_v33  ;;  %v644_v4 = vpop.xlane.xlu0 %643 }
 0x2d6   :  { %998 = vlog2.f32 %v644_v4 }
 0x2d7   :  { %v745_v42 = vsub.f32 %v1488_v51, %v706_v44 }
 0x2d9   :  { %777 = vst [vmem:[#allocation2 + $0xc0] sm:$0xff] %v745_v42 }
 0x2dc   :  { %v999_v23 = vpop.eup %998 }
 0x2dd   :  { %v708_v58 = vmul.f32 0.6931472, %v999_v23  ;;  %v646_v16 = vpop.xlane.xlu1 %645 }
 0x2de   :  { %1000 = vlog2.f32 %v646_v16 }
 0x2df   :  { %v746_v59 = vsub.f32 %v1493_v0, %v708_v58 }
 0x2e1   :  { %778 = vst [vmem:[#allocation2 + $0xc8] sm:$0xff] %v746_v59 }
 0x2e4   :  { %v1001_v55 = vpop.eup %1000 }
 0x2e5   :  { %v710_v45 = vmul.f32 0.6931472, %v1001_v55  ;;  %v648_v34 = vpop.xlane.xlu2 %647 }
 0x2e6   :  { %1002 = vlog2.f32 %v648_v34 }
 0x2e7   :  { %v747_v43 = vsub.f32 %v1498_v37, %v710_v45 }
 0x2e9   :  { %779 = vst [vmem:[#allocation2 + $0xd0] sm:$0xff] %v747_v43 }
 0x2ec   :  { %v1003_v2 = vpop.eup %1002 }
 0x2ed   :  { %v712_v12 = vmul.f32 0.6931472, %v1003_v2  ;;  %v650_v60 = vpop.xlane.xlu0 %649 }
 0x2ee   :  { %1004 = vlog2.f32 %v650_v60 }
 0x2ef   :  { %v748_v51 = vsub.f32 %v1503_v15, %v712_v12 }
 0x2f1   :  { %780 = vst [vmem:[#allocation2 + $0xd8] sm:$0xff] %v748_v51 }
 0x2f4   :  { %v1005_v40 = vpop.eup %1004 }
 0x2f5   :  { %v714_v39 = vmul.f32 0.6931472, %v1005_v40  ;;  %v652_v57 = vpop.xlane.xlu1 %651 }
 0x2f6   :  { %1006 = vlog2.f32 %v652_v57 }
 0x2f7   :  { %v749_v0 = vsub.f32 %v1507_v32, %v714_v39 }
 0x2f9   :  { %781 = vst [vmem:[#allocation2 + $0xe0] sm:$0xff] %v749_v0 }
 0x2fc   :  { %v1007_v62 = vpop.eup %1006 }
 0x2fd   :  { %v716_v26 = vmul.f32 0.6931472, %v1007_v62  ;;  %v654_v29 = vpop.xlane.xlu2 %653 }
 0x2fe   :  { %1008 = vlog2.f32 %v654_v29 }
 0x2ff   :  { %v750_v37 = vsub.f32 %v1511_v41, %v716_v26 }
 0x301   :  { %782 = vst [vmem:[#allocation2 + $0xe8] sm:$0xff] %v750_v37 }
 0x304   :  { %v1009_v20 = vpop.eup %1008 }
 0x305   :  { %v718_v19 = vmul.f32 0.6931472, %v1009_v20  ;;  %v656_v1 = vpop.xlane.xlu0 %655 }
 0x306   :  { %1010 = vlog2.f32 %v656_v1 }
 0x307   :  { %v751_v15 = vsub.f32 %v1515_v10, %v718_v19 }
 0x309   :  { %783 = vst [vmem:[#allocation2 + $0xf0] sm:$0xff] %v751_v15 }
 0x30c   :  { %v1011_v32 = vpop.eup %1010 }
 0x30d   :  { %v720_v21 = vmul.f32 0.6931472, %v1011_v32 }
 0x30f   :  { %v752_v41 = vsub.f32 %v1519_v36, %v720_v21 }
 0x311   :  { %784 = vst [vmem:[#allocation2 + $0xf8] sm:$0xff] %v752_v41 }
 0x312   :  { %797 = dma.vmem_to_hbm [thread:$0]  %s790_s25, 4096, %s792_s27, [#allocation3], %s1039_s1, %s1039_s1, %s1040_s28  }
 0x313   :  { %1036 = dma.done.wait [#allocation3], 4096  }
 0x314   :  { %1037 = vsyncadd [#allocation3], 4294963200 }
 0x315   :  { %802 = vsyncpa [#allocation3], 1 }

</bundles_post_ra>
